<compile_context>
chip_gen: v7x
topology: tpu7x:2x2x1
jax: 0.10.0
libtpu: 0.0.40
codegen_flags: <defaults>
</compile_context>

<pallas_src>
import functools

import jax
import jax.numpy as jnp
from jax.experimental import pallas as pl
from jax.experimental.pallas import tpu as pltpu

N_ACTIONS = 5
N_STATES = 32          # len(game.state_tran()) in the original script; synthetic here
HIDDEN = 50

LANE = 128


def _round_up(n, m):
    return ((n + m - 1) // m) * m


HIDDEN_P = _round_up(HIDDEN, LANE)      # 128 : lane-dense hidden width
OUT_P = _round_up(N_ACTIONS, LANE)      # 128 : lane-dense output width


def net_kernel(x_ref, w1_ref, b1_ref, wd_ref, bd_ref, wo_ref, bo_ref, o_ref):
    """Whole-MLP forward for one batch tile, entirely in VMEM."""
    x = x_ref[...]                                   # (bt, N_STATES) bf16

    # fc1 (no activation, exactly as in the PyTorch forward)
    h = jnp.dot(x, w1_ref[...], preferred_element_type=jnp.float32) + b1_ref[...]

    # Hoist dense-layer weight load and bias broadcast out of the unrolled loop
    # (JAX does not CSE broadcast_in_dim).
    wd = wd_ref[...]                                 # (HIDDEN_P, HIDDEN_P) bf16
    bd = jnp.broadcast_to(bd_ref[...], h.shape)      # (bt, HIDDEN_P) f32

    # 5x (dense1 + ReLU), reusing the same dense1 weights each iteration
    for _ in range(5):
        h = jnp.dot(h.astype(wd.dtype), wd, preferred_element_type=jnp.float32) + bd
        h = jnp.maximum(h, 0.0)

    # output head (lane-dense padded width; wrapper slices back to N_ACTIONS)
    o_ref[...] = (
        jnp.dot(h.astype(wo_ref.dtype), wo_ref[...],
                preferred_element_type=jnp.float32) + bo_ref[...]
    ).astype(o_ref.dtype)


@functools.partial(jax.jit, static_argnames=("batch_tile",))
def net_forward(x, w1p, b1p, wdp, bdp, wop, bop, *, batch_tile=256):
    B, _ = x.shape

    # Whole batch in one grid step when it fits a single tile; otherwise tiles
    # of `batch_tile` rows (grid sharded across cores via "parallel").
    bt = min(batch_tile, _round_up(B, 8))
    Bp = _round_up(B, bt)
    if Bp != B:
        x = jnp.pad(x, ((0, Bp - B), (0, 0)))
    x = x.astype(jnp.bfloat16)          # halves x-tile DMA bytes; bf16 MXU operand

    grid = (Bp // bt,)
    const = lambda i: (0, 0)            # weights/biases stay resident across steps

    out = pl.pallas_call(
        net_kernel,
        out_shape=jax.ShapeDtypeStruct((Bp, OUT_P), jnp.float32),
        grid_spec=pltpu.PrefetchScalarGridSpec(
            num_scalar_prefetch=0,
            grid=grid,
            in_specs=[
                pl.BlockSpec((bt, N_STATES), lambda i: (i, 0)),   # x tile
                pl.BlockSpec((N_STATES, HIDDEN_P), const),        # w1  (bf16)
                pl.BlockSpec((1, HIDDEN_P), const),               # b1  (f32)
                pl.BlockSpec((HIDDEN_P, HIDDEN_P), const),        # wd  (bf16)
                pl.BlockSpec((1, HIDDEN_P), const),               # bd  (f32)
                pl.BlockSpec((HIDDEN_P, OUT_P), const),           # wo  (bf16)
                pl.BlockSpec((1, OUT_P), const),                  # bo  (f32)
            ],
            out_specs=pl.BlockSpec((bt, OUT_P), lambda i: (i, 0)),
        ),
        compiler_params=pltpu.CompilerParams(
            dimension_semantics=("parallel",),
        ),
    )(x, w1p, b1p, wdp, bdp, wop, bop)

    return out[:B, :N_ACTIONS]


def init_params(key):
    """Deterministic synthetic init mirroring the PyTorch module:
    weights ~ N(0, 0.1); biases use nn.Linear's default U(-1/sqrt(fan_in), +)."""
    k = jax.random.split(key, 6)
    w1 = 0.1 * jax.random.normal(k[0], (HIDDEN, N_STATES), jnp.float32)   # (out, in)
    wd = 0.1 * jax.random.normal(k[1], (HIDDEN, HIDDEN), jnp.float32)
    wo = 0.1 * jax.random.normal(k[2], (N_ACTIONS, HIDDEN), jnp.float32)
    b1 = jax.random.uniform(k[3], (1, HIDDEN), jnp.float32,
                            -1.0 / jnp.sqrt(N_STATES), 1.0 / jnp.sqrt(N_STATES))
    bd = jax.random.uniform(k[4], (1, HIDDEN), jnp.float32,
                            -1.0 / jnp.sqrt(HIDDEN), 1.0 / jnp.sqrt(HIDDEN))
    bo = jax.random.uniform(k[5], (1, N_ACTIONS), jnp.float32,
                            -1.0 / jnp.sqrt(HIDDEN), 1.0 / jnp.sqrt(HIDDEN))
    # Transpose weights to (in, out) for y = x @ W + b.
    return w1.T, b1, wd.T, bd, wo.T, bo


def prepare_params(w1, b1, wd, bd, wo, bo):
    """Zero-pad to lane-dense (x128) widths and cast matmul operands to bf16.

    Padding is exact: extra hidden units see zero weights/biases, so they stay
    at ReLU(0)=0 and contribute nothing; extra output lanes are sliced off."""
    def pad2(a, rows, cols):
        return jnp.pad(a, ((0, rows - a.shape[0]), (0, cols - a.shape[1])))

    w1p = pad2(w1, N_STATES, HIDDEN_P).astype(jnp.bfloat16)
    b1p = pad2(b1, 1, HIDDEN_P).astype(jnp.float32)
    wdp = pad2(wd, HIDDEN_P, HIDDEN_P).astype(jnp.bfloat16)
    bdp = pad2(bd, 1, HIDDEN_P).astype(jnp.float32)
    wop = pad2(wo, HIDDEN_P, OUT_P).astype(jnp.bfloat16)
    bop = pad2(bo, 1, OUT_P).astype(jnp.float32)
    return w1p, b1p, wdp, bdp, wop, bop


def reference_forward(x, w1, b1, wd, bd, wo, bo):
    """Pure-JAX f32 reference of the PyTorch forward (for verification)."""
    h = x @ w1 + b1
    for _ in range(5):
        h = jnp.maximum(h @ wd + bd, 0.0)
    return h @ wo + bo


if __name__ == "__main__":
    key = jax.random.PRNGKey(0)
    kx, kp = jax.random.split(key)

    B = 16
    x = jax.random.normal(kx, (B, N_STATES), jnp.float32)
    params = init_params(kp)
    padded = prepare_params(*params)

    out = net_forward(x, *padded)
    out = jax.block_until_ready(out)

    ref = reference_forward(x, *params)
    assert out.shape == (B, N_ACTIONS)
    # bf16 MXU operands (f32 accumulation) -> loosened tolerance vs f32 reference.
    assert jnp.allclose(out, ref, atol=2e-2, rtol=2e-2), "mismatch vs reference"

    print("KERNEL_OK")
</pallas_src>

<mosaic_0001>
module attributes {stable_mosaic.version = 11 : i64} {
  func.func @net_kernel(%arg0: i32, %arg1: memref<16x32xbf16, #tpu.memory_space<vmem>>, %arg2: memref<32x128xbf16, #tpu.memory_space<vmem>>, %arg3: memref<1x128xf32, #tpu.memory_space<vmem>>, %arg4: memref<128x128xbf16, #tpu.memory_space<vmem>>, %arg5: memref<1x128xf32, #tpu.memory_space<vmem>>, %arg6: memref<128x128xbf16, #tpu.memory_space<vmem>>, %arg7: memref<1x128xf32, #tpu.memory_space<vmem>>, %arg8: memref<16x128xf32, #tpu.memory_space<vmem>>) attributes {dimension_semantics = [#tpu.dimension_semantics<parallel>], iteration_bounds = array<i64: 1>, scalar_prefetch = 0 : i64, scratch_operands = 0 : i64, tpu.core_type = #tpu.core_type<tc>, window_params = [{transform_indices = @transform_0, window_bounds = array<i64: 16, 32>}, {pipeline_mode = #tpu.pipeline_mode<synchronous>, transform_indices = @transform_1, window_bounds = array<i64: 32, 128>}, {pipeline_mode = #tpu.pipeline_mode<synchronous>, transform_indices = @transform_2, window_bounds = array<i64: 1, 128>}, {pipeline_mode = #tpu.pipeline_mode<synchronous>, transform_indices = @transform_3, window_bounds = array<i64: 128, 128>}, {pipeline_mode = #tpu.pipeline_mode<synchronous>, transform_indices = @transform_4, window_bounds = array<i64: 1, 128>}, {pipeline_mode = #tpu.pipeline_mode<synchronous>, transform_indices = @transform_5, window_bounds = array<i64: 128, 128>}, {pipeline_mode = #tpu.pipeline_mode<synchronous>, transform_indices = @transform_6, window_bounds = array<i64: 1, 128>}, {transform_indices = @transform_7, window_bounds = array<i64: 16, 128>}]} {
    %c0 = arith.constant 0 : index
    %c0_0 = arith.constant 0 : index
    %0 = vector.load %arg1[%c0, %c0_0] : memref<16x32xbf16, #tpu.memory_space<vmem>>, vector<16x32xbf16>
    %c0_1 = arith.constant 0 : index
    %c0_2 = arith.constant 0 : index
    %1 = vector.load %arg2[%c0_1, %c0_2] : memref<32x128xbf16, #tpu.memory_space<vmem>>, vector<32x128xbf16>
    %cst = arith.constant dense<0.000000e+00> : vector<16x128xf32>
    %2 = tpu.matmul %0, %1, %cst {dimension_numbers = #tpu.dot_dimension_numbers<[1], [0], [0], [1], [0, 0, 1, 1], [], []>} : vector<16x32xbf16>, vector<32x128xbf16>, vector<16x128xf32> -> vector<16x128xf32>
    %c0_3 = arith.constant 0 : index
    %c0_4 = arith.constant 0 : index
    %3 = vector.load %arg3[%c0_3, %c0_4] : memref<1x128xf32, #tpu.memory_space<vmem>>, vector<1x128xf32>
    %4 = vector.broadcast %3 : vector<1x128xf32> to vector<16x128xf32>
    %5 = arith.addf %2, %4 : vector<16x128xf32>
    %c0_5 = arith.constant 0 : index
    %c0_6 = arith.constant 0 : index
    %6 = vector.load %arg4[%c0_5, %c0_6] : memref<128x128xbf16, #tpu.memory_space<vmem>>, vector<128x128xbf16>
    %c0_7 = arith.constant 0 : index
    %c0_8 = arith.constant 0 : index
    %7 = vector.load %arg5[%c0_7, %c0_8] : memref<1x128xf32, #tpu.memory_space<vmem>>, vector<1x128xf32>
    %8 = vector.shape_cast %7 : vector<1x128xf32> to vector<1x128xf32>
    %9 = vector.broadcast %8 : vector<1x128xf32> to vector<16x128xf32>
    %10 = arith.truncf %5 : vector<16x128xf32> to vector<16x128xbf16>
    %cst_9 = arith.constant dense<0.000000e+00> : vector<16x128xf32>
    %11 = tpu.matmul %10, %6, %cst_9 {dimension_numbers = #tpu.dot_dimension_numbers<[1], [0], [0], [1], [0, 0, 1, 1], [], []>} : vector<16x128xbf16>, vector<128x128xbf16>, vector<16x128xf32> -> vector<16x128xf32>
    %12 = arith.addf %11, %9 : vector<16x128xf32>
    %cst_10 = arith.constant 0.000000e+00 : f32
    %13 = vector.broadcast %cst_10 : f32 to vector<16x128xf32>
    %14 = arith.maximumf %12, %13 : vector<16x128xf32>
    %15 = arith.truncf %14 : vector<16x128xf32> to vector<16x128xbf16>
    %cst_11 = arith.constant dense<0.000000e+00> : vector<16x128xf32>
    %16 = tpu.matmul %15, %6, %cst_11 {dimension_numbers = #tpu.dot_dimension_numbers<[1], [0], [0], [1], [0, 0, 1, 1], [], []>} : vector<16x128xbf16>, vector<128x128xbf16>, vector<16x128xf32> -> vector<16x128xf32>
    %17 = arith.addf %16, %9 : vector<16x128xf32>
    %cst_12 = arith.constant 0.000000e+00 : f32
    %18 = vector.broadcast %cst_12 : f32 to vector<16x128xf32>
    %19 = arith.maximumf %17, %18 : vector<16x128xf32>
    %20 = arith.truncf %19 : vector<16x128xf32> to vector<16x128xbf16>
    %cst_13 = arith.constant dense<0.000000e+00> : vector<16x128xf32>
    %21 = tpu.matmul %20, %6, %cst_13 {dimension_numbers = #tpu.dot_dimension_numbers<[1], [0], [0], [1], [0, 0, 1, 1], [], []>} : vector<16x128xbf16>, vector<128x128xbf16>, vector<16x128xf32> -> vector<16x128xf32>
    %22 = arith.addf %21, %9 : vector<16x128xf32>
    %cst_14 = arith.constant 0.000000e+00 : f32
    %23 = vector.broadcast %cst_14 : f32 to vector<16x128xf32>
    %24 = arith.maximumf %22, %23 : vector<16x128xf32>
    %25 = arith.truncf %24 : vector<16x128xf32> to vector<16x128xbf16>
    %cst_15 = arith.constant dense<0.000000e+00> : vector<16x128xf32>
    %26 = tpu.matmul %25, %6, %cst_15 {dimension_numbers = #tpu.dot_dimension_numbers<[1], [0], [0], [1], [0, 0, 1, 1], [], []>} : vector<16x128xbf16>, vector<128x128xbf16>, vector<16x128xf32> -> vector<16x128xf32>
    %27 = arith.addf %26, %9 : vector<16x128xf32>
    %cst_16 = arith.constant 0.000000e+00 : f32
    %28 = vector.broadcast %cst_16 : f32 to vector<16x128xf32>
    %29 = arith.maximumf %27, %28 : vector<16x128xf32>
    %30 = arith.truncf %29 : vector<16x128xf32> to vector<16x128xbf16>
    %cst_17 = arith.constant dense<0.000000e+00> : vector<16x128xf32>
    %31 = tpu.matmul %30, %6, %cst_17 {dimension_numbers = #tpu.dot_dimension_numbers<[1], [0], [0], [1], [0, 0, 1, 1], [], []>} : vector<16x128xbf16>, vector<128x128xbf16>, vector<16x128xf32> -> vector<16x128xf32>
    %32 = arith.addf %31, %9 : vector<16x128xf32>
    %cst_18 = arith.constant 0.000000e+00 : f32
    %33 = vector.broadcast %cst_18 : f32 to vector<16x128xf32>
    %34 = arith.maximumf %32, %33 : vector<16x128xf32>
    %35 = arith.truncf %34 : vector<16x128xf32> to vector<16x128xbf16>
    %c0_19 = arith.constant 0 : index
    %c0_20 = arith.constant 0 : index
    %36 = vector.load %arg6[%c0_19, %c0_20] : memref<128x128xbf16, #tpu.memory_space<vmem>>, vector<128x128xbf16>
    %cst_21 = arith.constant dense<0.000000e+00> : vector<16x128xf32>
    %37 = tpu.matmul %35, %36, %cst_21 {dimension_numbers = #tpu.dot_dimension_numbers<[1], [0], [0], [1], [0, 0, 1, 1], [], []>} : vector<16x128xbf16>, vector<128x128xbf16>, vector<16x128xf32> -> vector<16x128xf32>
    %c0_22 = arith.constant 0 : index
    %c0_23 = arith.constant 0 : index
    %38 = vector.load %arg7[%c0_22, %c0_23] : memref<1x128xf32, #tpu.memory_space<vmem>>, vector<1x128xf32>
    %39 = vector.broadcast %38 : vector<1x128xf32> to vector<16x128xf32>
    %40 = arith.addf %37, %39 : vector<16x128xf32>
    %c0_24 = arith.constant 0 : index
    %c0_25 = arith.constant 0 : index
    %41 = vector.load %arg8[%c0_24, %c0_25] : memref<16x128xf32, #tpu.memory_space<vmem>>, vector<16x128xf32>
    tpu.vector_store %arg8[%c0_24, %c0_25], %40 {strides = array<i32>} : memref<16x128xf32, #tpu.memory_space<vmem>>, vector<16x128xf32>,
    return
  }
  func.func @transform_0(%arg0: i32) -> (i32, i32) {
    %c0_i32 = arith.constant 0 : i32
    %c0_i32_0 = arith.constant 0 : i32
    return %arg0, %c0_i32 : i32, i32
  }
  func.func @transform_1(%arg0: i32) -> (i32, i32) {
    %c0_i32 = arith.constant 0 : i32
    %c0_i32_0 = arith.constant 0 : i32
    %c0_i32_1 = arith.constant 0 : i32
    return %c0_i32, %c0_i32_0 : i32, i32
  }
  func.func @transform_2(%arg0: i32) -> (i32, i32) {
    %c0_i32 = arith.constant 0 : i32
    %c0_i32_0 = arith.constant 0 : i32
    %c0_i32_1 = arith.constant 0 : i32
    return %c0_i32, %c0_i32_0 : i32, i32
  }
  func.func @transform_3(%arg0: i32) -> (i32, i32) {
    %c0_i32 = arith.constant 0 : i32
    %c0_i32_0 = arith.constant 0 : i32
    %c0_i32_1 = arith.constant 0 : i32
    return %c0_i32, %c0_i32_0 : i32, i32
  }
  func.func @transform_4(%arg0: i32) -> (i32, i32) {
    %c0_i32 = arith.constant 0 : i32
    %c0_i32_0 = arith.constant 0 : i32
    %c0_i32_1 = arith.constant 0 : i32
    return %c0_i32, %c0_i32_0 : i32, i32
  }
  func.func @transform_5(%arg0: i32) -> (i32, i32) {
    %c0_i32 = arith.constant 0 : i32
    %c0_i32_0 = arith.constant 0 : i32
    %c0_i32_1 = arith.constant 0 : i32
    return %c0_i32, %c0_i32_0 : i32, i32
  }
  func.func @transform_6(%arg0: i32) -> (i32, i32) {
    %c0_i32 = arith.constant 0 : i32
    %c0_i32_0 = arith.constant 0 : i32
    %c0_i32_1 = arith.constant 0 : i32
    return %c0_i32, %c0_i32_0 : i32, i32
  }
  func.func @transform_7(%arg0: i32) -> (i32, i32) {
    %c0_i32 = arith.constant 0 : i32
    %c0_i32_0 = arith.constant 0 : i32
    return %arg0, %c0_i32 : i32, i32
  }
}

</mosaic_0001>

<bundles_post_ra>
// kernel: net_forward.1
= control target key start
LH: loop header
LB: loop body
LE: loop exit
PB: predicated region body
PF: predicated region fallthrough
CT: control target
= control target key end

     0   :  { %12 = vsyncpa [#allocation3], 0  ;;  %s1049_s0 = inlined_call_operand.vmem [shape: bf16[16,32], index: 0, kind: input, shape index: {}]   ;;  %s1050_s1 = inlined_call_operand.vmem [shape: bf16[32,128], index: 1, kind: input, shape index: {}]   ;;  %s1051_s2 = inlined_call_operand.vmem [shape: f32[1,128], index: 2, kind: input, shape index: {}]   ;;  %s1052_s3 = inlined_call_operand.hbm [shape: bf16[128,128], index: 3, kind: input, shape index: {}]   ;;  %s1053_s4 = inlined_call_operand.vmem [shape: f32[1,128], index: 4, kind: input, shape index: {}]   ;;  %s1054_s5 = inlined_call_operand.hbm [shape: bf16[128,128], index: 5, kind: input, shape index: {}]   ;;  %s1055_s6 = inlined_call_operand.vmem [shape: f32[1,128], index: 6, kind: input, shape index: {}]   ;;  %s1056_s7 = inlined_call_operand.vmem [shape: f32[16,128], index: 7, kind: output, shape index: {}]  }
   0x1   :  { %13 = vsyncpa [#allocation5], 0  ;;  %s823_s24 = smov [#allocation2]   ;;  %s775_s28 = scalar_lea.hbm %s1052_s3, 1024 }
   0x2   :  { %s25_s25 = sshll.u32 %s823_s24, 4  ;;  %p776_p0 = scmp.ne.s32.totalorder %s1052_s3, %s775_s28  ;;  %s26_s25 = int_to_ptr.vmem [resolvable:$true] %s25_s25 }
   0x3   :  { %p779_p1 = scmp.lt.u32.totalorder %s775_s28, %s1052_s3 }
   0x5   :  { %p781_p2 = pnand %p779_p1, %p776_p0 }
   0x7   :  { %784 = shalt.err (!%p781_p2)
}
   0x8   :  { %s785_s10 = scalar_lea.vmem %s26_s25, 1024  ;;  %p790_p4 = scmp.lt.s32.totalorder %s26_s25, %s26_s25 }
   0x9   :  { %p786_p3 = scmp.ne.s32.totalorder %s26_s25, %s785_s10  ;;  %p791_p5 = scmp.lt.s32.totalorder %s785_s10, %s785_s10 }
   0xb   :  { %p792_p6 = por %p791_p5, %p790_p4 }
   0xd   :  { %p793_p7 = pnand %p792_p6, %p786_p3 }
   0xf   :  { %796 = shalt.err (!%p793_p7)
}
  0x10   :  { %s824_s11 = smov 64   ;;  %s825_s12 = smov 4  }
  0x11   :  { %31 = dma.hbm_to_vmem [thread:$0]  %s1052_s3, 1024, %s26_s25, [#allocation3], %s824_s11, %s824_s11, %s825_s12  }
  0x12   :  { %s826_s15 = smov [#allocation4]   ;;  %s797_s19 = scalar_lea.hbm %s1054_s5, 1024 }
  0x13   :  { %s39_s16 = sshll.u32 %s826_s15, 4  ;;  %p798_p8 = scmp.ne.s32.totalorder %s1054_s5, %s797_s19  ;;  %s40_s16 = int_to_ptr.vmem [resolvable:$true] %s39_s16 }
  0x14   :  { %p801_p9 = scmp.lt.u32.totalorder %s797_s19, %s1054_s5 }
  0x16   :  { %p803_p10 = pnand %p801_p9, %p798_p8 }
  0x18   :  { %806 = shalt.err (!%p803_p10)
}
  0x19   :  { %s807_s24 = scalar_lea.vmem %s40_s16, 1024  ;;  %p812_p12 = scmp.lt.s32.totalorder %s40_s16, %s40_s16 }
  0x1a   :  { %p808_p11 = scmp.ne.s32.totalorder %s40_s16, %s807_s24  ;;  %p813_p13 = scmp.lt.s32.totalorder %s807_s24, %s807_s24 }
  0x1c   :  { %p814_p0 = por %p813_p13, %p812_p12 }
  0x1e   :  { %p815_p1 = pnand %p814_p0, %p808_p11 }
  0x20   :  { %818 = shalt.err (!%p815_p1)
}
  0x21   :  { %45 = dma.hbm_to_vmem [thread:$0]  %s1054_s5, 1024, %s40_s16, [#allocation5], %s824_s11, %s824_s11, %s825_s12  }
  0x22   :  { %819 = dma.done.wait [#allocation3], 1024  }
  0x23   :  { %820 = vsyncadd [#allocation3], 4294966272 }
  0x24   :  { %821 = dma.done.wait [#allocation5], 1024  }
  0x25   :  { %822 = vsyncadd [#allocation5], 4294966272  ;;  %v827_v0 = vmov 0.0   ;;  %vm828_vm0 = vmmov 0   ;;  %v756_v1 = vld [vmem:[%s1050_s1] sm:$0xff]   ;;  %v757_v2 = vld [vmem:[%s1050_s1 + $0x8] sm:$0xff]  }
  0x26   :  { %622 = vmatprep.subr.bf16.mxu0 %v827_v0  ;;  %626 = vmatprep.mubr.msk.bf16.mxu0 %vm828_vm0, %v827_v0  ;;  %v906_v3 = vld [vmem:[#allocation2] sm:$0xff]   ;;  %v912_v5 = vld [vmem:[#allocation2 + $0x8] sm:$0xff]   ;;  %vm85_vm1 = vcmask 261120   ;;  %v917_v6 = vld [vmem:[#allocation2 + $0x10] sm:$0xff]  }
  0x27   :  { %630 = vmatprep.subr.bf16.mxu1 %v827_v0  ;;  %646 = vmatprep.mubr.msk.bf16.mxu1 %vm828_vm0, %v827_v0  ;;  %v758_v4 = vld [vmem:[%s1049_s0] sm:$0xff]   ;;  %v921_v7 = vld [vmem:[#allocation2 + $0x18] sm:$0xff]   ;;  %v937_v9 = vld [vmem:[#allocation2 + $0x28] sm:$0xff]  }
  0x28   :  { %623 = vmatpush3.bf16.msra.mxu0 %v756_v1  ;;  %631 = vmatpush3.bf16.msra.mxu1 %v906_v3  ;;  %v931_v8 = vld [vmem:[#allocation2 + $0x20] sm:$0xff]   ;;  %v948_v10 = vld [vmem:[#allocation2 + $0x30] sm:$0xff]   ;;  %v954_v11 = vld [vmem:[#allocation2 + $0x38] sm:$0xff]  }
  0x29   :  { %624 = vmatprep.subr.bf16.mxu0 %v827_v0  ;;  %632 = vmatprep.subr.bf16.mxu1 %v827_v0  ;;  %v542_v12 = vld [vmem:[%s1051_s2] ss:$0 sm:$0xff]  ;;  %v768_v49 = vld [vmem:[#allocation4 + $0x8] sm:$0xff]   ;;  %v769_v50 = vld [vmem:[#allocation4 + $0x10] sm:$0xff]  }
  0x2a   :  { %v984_v20 = vld [vmem:[%s1053_s4] ss:$0 sm:$0xff]  ;;  %v770_v51 = vld [vmem:[#allocation4 + $0x18] sm:$0xff]   ;;  %v772_v53 = vld [vmem:[#allocation4 + $0x28] sm:$0xff]  }
  0x2b   :  { %v767_v48 = vld [vmem:[#allocation4] sm:$0xff]   ;;  %v773_v63 = vld [vmem:[#allocation4 + $0x30] sm:$0xff]   ;;  %v774_v1 = vld [vmem:[#allocation4 + $0x38] sm:$0xff]  }
  0x2c   :  { %625 = vmatpush3.bf16.msra.mxu0 %v757_v2  ;;  %633 = vmatpush3.bf16.msra.mxu1 %v912_v5  ;;  %v771_v52 = vld [vmem:[#allocation4 + $0x20] sm:$0xff]  }
  0x2d   :  { %650 = vmatprep.subr.bf16.mxu0 %v827_v0  ;;  %634 = vmatprep.subr.bf16.mxu1 %v827_v0 }
  0x2f   :  { %627 = vmatmul.mubr.msk.bf16.vlgmr.msra.gmra.mrb[0].mxu0 %vm85_vm1, %v758_v4 }
  0x30   :  { %651 = vmatpush3.bf16.msra.mxu0 %v906_v3  ;;  %666 = vmatprep.mubr.msk.bf16.mxu0 %vm828_vm0, %v827_v0 }
  0x31   :  { %652 = vmatprep.subr.bf16.mxu0 %v827_v0  ;;  %635 = vmatpush3.bf16.msra.mxu1 %v917_v6 }
  0x32   :  { %636 = vmatprep.subr.bf16.mxu1 %v827_v0 }
  0x34   :  { %653 = vmatpush3.bf16.msra.mxu0 %v912_v5 }
  0x35   :  { %654 = vmatprep.subr.bf16.mxu0 %v827_v0  ;;  %637 = vmatpush3.bf16.msra.mxu1 %v921_v7 }
  0x36   :  { %638 = vmatprep.subr.bf16.mxu1 %v827_v0 }
  0x38   :  { %655 = vmatpush3.bf16.msra.mxu0 %v917_v6 }
  0x39   :  { %656 = vmatprep.subr.bf16.mxu0 %v827_v0  ;;  %639 = vmatpush3.bf16.msra.mxu1 %v931_v8 }
  0x3a   :  { %640 = vmatprep.subr.bf16.mxu1 %v827_v0 }
  0x3c   :  { %657 = vmatpush3.bf16.msra.mxu0 %v921_v7 }
  0x3d   :  { %658 = vmatprep.subr.bf16.mxu0 %v827_v0  ;;  %641 = vmatpush3.bf16.msra.mxu1 %v937_v9 }
  0x3e   :  { %642 = vmatprep.subr.bf16.mxu1 %v827_v0 }
  0x40   :  { %659 = vmatpush3.bf16.msra.mxu0 %v931_v8 }
  0x41   :  { %660 = vmatprep.subr.bf16.mxu0 %v827_v0  ;;  %643 = vmatpush3.bf16.msra.mxu1 %v948_v10 }
  0x42   :  { %644 = vmatprep.subr.bf16.mxu1 %v827_v0 }
  0x44   :  { %661 = vmatpush3.bf16.msra.mxu0 %v937_v9 }
  0x45   :  { %662 = vmatprep.subr.bf16.mxu0 %v827_v0  ;;  %645 = vmatpush3.bf16.msra.mxu1 %v954_v11 }
  0x46   :  { %670 = vmatprep.subr.bf16.mxu1 %v827_v0 }
  0x48   :  { %663 = vmatpush3.bf16.msra.mxu0 %v948_v10 }
  0x49   :  { %664 = vmatprep.subr.bf16.mxu0 %v827_v0 }
  0x4c   :  { %665 = vmatpush3.bf16.msra.mxu0 %v954_v11 }
  0x4d   :  { %690 = vmatprep.subr.bf16.mxu0 %v827_v0 }
 0x102   :  { %v123_v13 = vpop.f32.mrb[0].mxu0 }
 0x103   :  { %v628_v14 = vpop.f32.mrb[1].mxu0  ;;  %v124_v16 = vadd.f32 %v542_v12, %v123_v13 }
 0x104   :  { %v126_v15 = vpop.f32.mrb[2].mxu0 }
 0x105   :  { %v127_v17 = vadd.f32 %v542_v12, %v126_v15  ;;  %v629_v18 = vpop.f32.mrb[3].mxu0 }
 0x107   :  { %v153_v19 = vpack.c.bf16 %v127_v17, %v124_v16 }
 0x109   :  { %647 = vmatmul.mubr.bf16.vlgmr.msra.gmra.mrb[0].mxu1 %v153_v19 }
 0x10a   :  { %671 = vmatpush3.bf16.msra.mxu1 %v906_v3  ;;  %686 = vmatprep.mubr.msk.bf16.mxu1 %vm828_vm0, %v827_v0 }
 0x10b   :  { %672 = vmatprep.subr.bf16.mxu1 %v827_v0 }
 0x10e   :  { %673 = vmatpush3.bf16.msra.mxu1 %v912_v5 }
 0x10f   :  { %674 = vmatprep.subr.bf16.mxu1 %v827_v0 }
 0x112   :  { %675 = vmatpush3.bf16.msra.mxu1 %v917_v6 }
 0x113   :  { %676 = vmatprep.subr.bf16.mxu1 %v827_v0 }
 0x116   :  { %677 = vmatpush3.bf16.msra.mxu1 %v921_v7 }
 0x117   :  { %678 = vmatprep.subr.bf16.mxu1 %v827_v0 }
 0x11a   :  { %679 = vmatpush3.bf16.msra.mxu1 %v931_v8 }
 0x11b   :  { %680 = vmatprep.subr.bf16.mxu1 %v827_v0 }
 0x11e   :  { %681 = vmatpush3.bf16.msra.mxu1 %v937_v9 }
 0x11f   :  { %682 = vmatprep.subr.bf16.mxu1 %v827_v0 }
 0x122   :  { %683 = vmatpush3.bf16.msra.mxu1 %v948_v10 }
 0x123   :  { %684 = vmatprep.subr.bf16.mxu1 %v827_v0 }
 0x126   :  { %685 = vmatpush3.bf16.msra.mxu1 %v954_v11 }
 0x127   :  { %710 = vmatprep.subr.bf16.mxu1 %v827_v0 }
 0x1dc   :  { %v236_v21 = vpop.f32.mrb[0].mxu1 }
 0x1dd   :  { %v237_v22 = vadd.f32 %v984_v20, %v236_v21  ;;  %v648_v23 = vpop.f32.mrb[1].mxu1 }
 0x1de   :  { %v239_v24 = vpop.f32.mrb[2].mxu1 }
 0x1df   :  { %v240_v25 = vadd.f32 %v984_v20, %v239_v24  ;;  %v649_v26 = vpop.f32.mrb[3].mxu1  ;;  %v243_v27 = vmax.f32 %v237_v22, 0.0 }
 0x1e1   :  { %v244_v28 = vmax.f32 %v240_v25, 0.0 }
 0x1e3   :  { %v245_v29 = vpack.c.bf16 %v244_v28, %v243_v27 }
 0x1e5   :  { %667 = vmatmul.mubr.bf16.vlgmr.msra.gmra.mrb[4].mxu0 %v245_v29 }
 0x1e6   :  { %691 = vmatpush3.bf16.msra.mxu0 %v906_v3  ;;  %706 = vmatprep.mubr.msk.bf16.mxu0 %vm828_vm0, %v827_v0 }
 0x1e7   :  { %692 = vmatprep.subr.bf16.mxu0 %v827_v0 }
 0x1ea   :  { %693 = vmatpush3.bf16.msra.mxu0 %v912_v5 }
 0x1eb   :  { %694 = vmatprep.subr.bf16.mxu0 %v827_v0 }
 0x1ee   :  { %695 = vmatpush3.bf16.msra.mxu0 %v917_v6 }
 0x1ef   :  { %696 = vmatprep.subr.bf16.mxu0 %v827_v0 }
 0x1f2   :  { %697 = vmatpush3.bf16.msra.mxu0 %v921_v7 }
 0x1f3   :  { %698 = vmatprep.subr.bf16.mxu0 %v827_v0 }
 0x1f6   :  { %699 = vmatpush3.bf16.msra.mxu0 %v931_v8 }
 0x1f7   :  { %700 = vmatprep.subr.bf16.mxu0 %v827_v0 }
 0x1fa   :  { %701 = vmatpush3.bf16.msra.mxu0 %v937_v9 }
 0x1fb   :  { %702 = vmatprep.subr.bf16.mxu0 %v827_v0 }
 0x1fe   :  { %703 = vmatpush3.bf16.msra.mxu0 %v948_v10 }
 0x1ff   :  { %704 = vmatprep.subr.bf16.mxu0 %v827_v0 }
 0x202   :  { %705 = vmatpush3.bf16.msra.mxu0 %v954_v11 }
 0x203   :  { %730 = vmatprep.subr.bf16.mxu0 %v827_v0 }
 0x2b8   :  { %v280_v30 = vpop.f32.mrb[4].mxu0 }
 0x2b9   :  { %v281_v31 = vadd.f32 %v984_v20, %v280_v30  ;;  %v668_v32 = vpop.f32.mrb[5].mxu0 }
 0x2ba   :  { %v283_v33 = vpop.f32.mrb[6].mxu0 }
 0x2bb   :  { %v284_v34 = vadd.f32 %v984_v20, %v283_v33  ;;  %v669_v35 = vpop.f32.mrb[7].mxu0  ;;  %v287_v36 = vmax.f32 %v281_v31, 0.0 }
 0x2bd   :  { %v288_v37 = vmax.f32 %v284_v34, 0.0 }
 0x2bf   :  { %v289_v38 = vpack.c.bf16 %v288_v37, %v287_v36 }
 0x2c1   :  { %687 = vmatmul.mubr.bf16.vlgmr.msra.gmra.mrb[4].mxu1 %v289_v38 }
 0x2c2   :  { %711 = vmatpush3.bf16.msra.mxu1 %v906_v3  ;;  %726 = vmatprep.mubr.msk.bf16.mxu1 %vm828_vm0, %v827_v0 }
 0x2c3   :  { %712 = vmatprep.subr.bf16.mxu1 %v827_v0 }
 0x2c6   :  { %713 = vmatpush3.bf16.msra.mxu1 %v912_v5 }
 0x2c7   :  { %714 = vmatprep.subr.bf16.mxu1 %v827_v0 }
 0x2ca   :  { %715 = vmatpush3.bf16.msra.mxu1 %v917_v6 }
 0x2cb   :  { %716 = vmatprep.subr.bf16.mxu1 %v827_v0 }
 0x2ce   :  { %717 = vmatpush3.bf16.msra.mxu1 %v921_v7 }
 0x2cf   :  { %718 = vmatprep.subr.bf16.mxu1 %v827_v0 }
 0x2d2   :  { %719 = vmatpush3.bf16.msra.mxu1 %v931_v8 }
 0x2d3   :  { %720 = vmatprep.subr.bf16.mxu1 %v827_v0 }
 0x2d6   :  { %721 = vmatpush3.bf16.msra.mxu1 %v937_v9 }
 0x2d7   :  { %722 = vmatprep.subr.bf16.mxu1 %v827_v0 }
 0x2da   :  { %723 = vmatpush3.bf16.msra.mxu1 %v948_v10 }
 0x2db   :  { %724 = vmatprep.subr.bf16.mxu1 %v827_v0 }
 0x2de   :  { %725 = vmatpush3.bf16.msra.mxu1 %v954_v11  ;;  %v556_v11 = vld [vmem:[%s1055_s6] ss:$0 sm:$0xff] }
 0x394   :  { %v324_v39 = vpop.f32.mrb[4].mxu1 }
 0x395   :  { %v325_v40 = vadd.f32 %v984_v20, %v324_v39  ;;  %v688_v41 = vpop.f32.mrb[5].mxu1 }
 0x396   :  { %v327_v42 = vpop.f32.mrb[6].mxu1 }
 0x397   :  { %v328_v43 = vadd.f32 %v984_v20, %v327_v42  ;;  %v689_v44 = vpop.f32.mrb[7].mxu1  ;;  %v331_v45 = vmax.f32 %v325_v40, 0.0 }
 0x399   :  { %v332_v46 = vmax.f32 %v328_v43, 0.0 }
 0x39b   :  { %v333_v47 = vpack.c.bf16 %v332_v46, %v331_v45 }
 0x39d   :  { %707 = vmatmul.mubr.bf16.vlgmr.msra.gmra.mrb[8].mxu0 %v333_v47 }
 0x39e   :  { %746 = vmatprep.mubr.msk.bf16.mxu0 %vm828_vm0, %v827_v0  ;;  %731 = vmatpush3.bf16.msra.mxu0 %v767_v48 }
 0x39f   :  { %732 = vmatprep.subr.bf16.mxu0 %v827_v0 }
 0x3a2   :  { %733 = vmatpush3.bf16.msra.mxu0 %v768_v49 }
 0x3a3   :  { %734 = vmatprep.subr.bf16.mxu0 %v827_v0 }
 0x3a6   :  { %735 = vmatpush3.bf16.msra.mxu0 %v769_v50 }
 0x3a7   :  { %736 = vmatprep.subr.bf16.mxu0 %v827_v0 }
 0x3aa   :  { %737 = vmatpush3.bf16.msra.mxu0 %v770_v51 }
 0x3ab   :  { %738 = vmatprep.subr.bf16.mxu0 %v827_v0 }
 0x3ae   :  { %739 = vmatpush3.bf16.msra.mxu0 %v771_v52 }
 0x3af   :  { %740 = vmatprep.subr.bf16.mxu0 %v827_v0 }
 0x3b2   :  { %741 = vmatpush3.bf16.msra.mxu0 %v772_v53 }
 0x3b3   :  { %742 = vmatprep.subr.bf16.mxu0 %v827_v0 }
 0x3b6   :  { %743 = vmatpush3.bf16.msra.mxu0 %v773_v63 }
 0x3b7   :  { %744 = vmatprep.subr.bf16.mxu0 %v827_v0 }
 0x3ba   :  { %745 = vmatpush3.bf16.msra.mxu0 %v774_v1 }
 0x470   :  { %v368_v54 = vpop.f32.mrb[8].mxu0 }
 0x471   :  { %v369_v55 = vadd.f32 %v984_v20, %v368_v54  ;;  %v708_v56 = vpop.f32.mrb[9].mxu0 }
 0x472   :  { %v371_v57 = vpop.f32.mrb[10].mxu0 }
 0x473   :  { %v372_v58 = vadd.f32 %v984_v20, %v371_v57  ;;  %v709_v59 = vpop.f32.mrb[11].mxu0  ;;  %v375_v60 = vmax.f32 %v369_v55, 0.0 }
 0x475   :  { %v376_v61 = vmax.f32 %v372_v58, 0.0 }
 0x477   :  { %v377_v62 = vpack.c.bf16 %v376_v61, %v375_v60 }
 0x479   :  { %727 = vmatmul.mubr.bf16.vlgmr.msra.gmra.mrb[8].mxu1 %v377_v62 }
 0x54c   :  { %v412_v2 = vpop.f32.mrb[8].mxu1 }
 0x54d   :  { %v413_v3 = vadd.f32 %v984_v20, %v412_v2  ;;  %v728_v4 = vpop.f32.mrb[9].mxu1 }
 0x54e   :  { %v415_v5 = vpop.f32.mrb[10].mxu1 }
 0x54f   :  { %v416_v6 = vadd.f32 %v984_v20, %v415_v5  ;;  %v729_v7 = vpop.f32.mrb[11].mxu1  ;;  %v419_v8 = vmax.f32 %v413_v3, 0.0 }
 0x551   :  { %v420_v9 = vmax.f32 %v416_v6, 0.0 }
 0x553   :  { %v421_v10 = vpack.c.bf16 %v420_v9, %v419_v8 }
 0x555   :  { %747 = vmatmul.mubr.bf16.vlgmr.msra.gmra.mrb[12].mxu0 %v421_v10 }
 0x628   :  { %v527_v12 = vpop.f32.mrb[12].mxu0 }
 0x629   :  { %v528_v0 = vadd.f32 %v556_v11, %v527_v12  ;;  %v748_v13 = vpop.f32.mrb[13].mxu0 }
 0x62a   :  { %v530_v14 = vpop.f32.mrb[14].mxu0 }
 0x62b   :  { %534 = vst [vmem:[%s1056_s7] sm:$0xff] %v528_v0  ;;  %v531_v15 = vadd.f32 %v556_v11, %v530_v14  ;;  %v749_v16 = vpop.f32.mrb[15].mxu0 }
 0x62d   :  { %535 = vst [vmem:[%s1056_s7 + $0x8] sm:$0xff] %v531_v15 }
 0x62e   :  { %540 = vsyncpa [#allocation3], 1 }
 0x62f   :  { %541 = vsyncpa [#allocation5], 1 }

</bundles_post_ra>
